<compile_context>
chip_gen: v7x
topology: tpu7x:2x2x1
jax: 0.10.0
libtpu: 0.0.40
codegen_flags: <defaults>
</compile_context>

<pallas_src>
import jax
import jax.numpy as jnp
from jax.experimental import pallas as pl
from jax.experimental.pallas import tpu as pltpu


# ----------------------------- config (conf.*) ------------------------------
ENC_HID_DIM = 32          # conf.enc_hid_dim
DEC_HID_DIM = 32          # conf.dec_hid_dim
RATING_RANGE = 5          # conf.rating_range -> rating table has RATING_RANGE + 1 rows
USER_NUM = 10
ITEM_NUM = 20
BATCH = 8

K_USER = USER_NUM
K_ITEM = ITEM_NUM
K_RATE = RATING_RANGE + 1
K_BIAS_COL = K_USER + K_ITEM + K_RATE            # 36: constant-1 bias column
K_RAW = K_BIAS_COL + 1                           # 37
K_PAD = ((K_RAW + 7) // 8) * 8                   # 40 (sublane aligned)
OUT_LANES = 128                                  # h | u_e | i_e | r_e (32 lanes each)


# ------------------------------- Pallas kernel ------------------------------
def encoder_kernel(idx_ref, big_ref, out_ref):
    """idx_ref: (TB, 3) int32 pre-offset indices, big_ref: (K_PAD, 128) f32,
    out_ref: (TB, 128) f32 packed [h | u_e | i_e | r_e]."""
    TB = idx_ref.shape[0]
    idx = idx_ref[...]                                            # (TB, 3)

    # Combined one-hot with 4 ones per row: user col, item col, rating col,
    # constant bias col.  Pure VPU compares/ORs on one (TB, K_PAD) tile.
    col = jax.lax.broadcasted_iota(jnp.int32, (TB, K_PAD), 1)
    hit = ((col == idx[:, 0:1]) | (col == idx[:, 1:2]) |
           (col == idx[:, 2:3]) | (col == K_BIAS_COL))
    onehot = hit.astype(jnp.float32)                              # (TB, K_PAD)

    # Single MXU matmul produces pre-tanh hidden and all three embeddings.
    packed = jnp.dot(onehot, big_ref[...],
                     preferred_element_type=jnp.float32)          # (TB, 128)

    # tanh only on the hidden lanes (0:DEC_HID_DIM); embeddings pass through.
    lane = jax.lax.broadcasted_iota(jnp.int32, (TB, OUT_LANES), 1)
    out_ref[...] = jnp.where(lane < DEC_HID_DIM, jnp.tanh(packed), packed)


# ------------------------- fused-weight construction -------------------------
def build_fused_weight(params):
    """Big = block matrix so that onehot @ Big = [concat@W + b | u_e | i_e | r_e]."""
    Tu = params["user_embedding"]
    Ti = params["item_embedding"]
    Tr = params["rating_embedding"]
    W = params["hidden_w"]                          # (3E, D), x @ W convention
    b = params["hidden_b"].reshape(1, DEC_HID_DIM)
    E = ENC_HID_DIM
    W0, W1, W2 = W[0:E], W[E:2 * E], W[2 * E:3 * E]

    def z(r, c):
        return jnp.zeros((r, c), jnp.float32)

    row_u = jnp.concatenate([Tu @ W0, Tu,            z(K_USER, E), z(K_USER, E)], axis=1)
    row_i = jnp.concatenate([Ti @ W1, z(K_ITEM, E),  Ti,           z(K_ITEM, E)], axis=1)
    row_r = jnp.concatenate([Tr @ W2, z(K_RATE, E),  z(K_RATE, E), Tr],           axis=1)
    row_b = jnp.concatenate([b,       z(1, E),       z(1, E),      z(1, E)],      axis=1)
    big = jnp.concatenate(
        [row_u, row_i, row_r, row_b, z(K_PAD - K_RAW, OUT_LANES)], axis=0)
    return big.astype(jnp.float32)                  # (K_PAD, 128)


# --------------------------------- wrapper -----------------------------------
def encoder_forward_pallas(params, user, item, rating):
    """Fused Encoder.forward -> (hidden_state, user_embed, item_embed, rating_embed)."""
    B = user.shape[0]

    # One (B, 3) int32 input with the block-diagonal column offsets pre-added.
    idx = jnp.stack(
        [user.astype(jnp.int32),
         item.astype(jnp.int32) + K_USER,
         rating.astype(jnp.int32) + K_USER + K_ITEM],
        axis=1)

    # Batch tiling: single grid step for small B, 256-row tiles for large B.
    if B <= 256:
        B_pad = max(8, ((B + 7) // 8) * 8)
        TB = B_pad
    else:
        TB = 256
        B_pad = ((B + TB - 1) // TB) * TB
    if B_pad != B:
        idx = jnp.pad(idx, ((0, B_pad - B), (0, 0)))   # pad rows sliced off below

    big = build_fused_weight(params)

    packed = pl.pallas_call(
        encoder_kernel,
        out_shape=jax.ShapeDtypeStruct((B_pad, OUT_LANES), jnp.float32),
        grid=(B_pad // TB,),
        in_specs=[
            pl.BlockSpec((TB, 3), lambda b: (b, 0)),            # indices
            pl.BlockSpec((K_PAD, OUT_LANES), lambda b: (0, 0)),  # fused weight
        ],
        out_specs=pl.BlockSpec((TB, OUT_LANES), lambda b: (b, 0)),
        compiler_params=pltpu.CompilerParams(
            dimension_semantics=("parallel",)),                 # v7x megacore sharding
    )(idx, big)

    E = ENC_HID_DIM
    D = DEC_HID_DIM
    hidden = packed[:B, 0:D]
    u_e = packed[:B, D:D + E]
    i_e = packed[:B, D + E:D + 2 * E]
    r_e = packed[:B, D + 2 * E:D + 3 * E]

    # .view(-1, dec_hid_dim) is a no-op for 2-D (B, DEC_HID) input
    hidden = hidden.reshape(-1, D)
    return hidden, u_e, i_e, r_e


# ------------------------------ Encoder params --------------------------------
def init_encoder_params(key):
    """Deterministic synthetic parameters matching the torch module's shapes."""
    k_u, k_i, k_r, k_w, k_b = jax.random.split(key, 5)
    return {
        "user_embedding": jax.random.normal(k_u, (USER_NUM, ENC_HID_DIM), jnp.float32) * 0.1,
        "item_embedding": jax.random.normal(k_i, (ITEM_NUM, ENC_HID_DIM), jnp.float32) * 0.1,
        "rating_embedding": jax.random.normal(
            k_r, (RATING_RANGE + 1, ENC_HID_DIM), jnp.float32) * 0.1,
        # stored as (in_features, out_features) for x @ W
        "hidden_w": jax.random.normal(
            k_w, (3 * ENC_HID_DIM, DEC_HID_DIM), jnp.float32) * 0.1,
        "hidden_b": jax.random.normal(k_b, (1, DEC_HID_DIM), jnp.float32) * 0.1,
    }


# ----------------------------------- main -------------------------------------
if __name__ == "__main__":
    key = jax.random.PRNGKey(0)
    k_params, k_u, k_i, k_r = jax.random.split(key, 4)

    params = init_encoder_params(k_params)

    user = jax.random.randint(k_u, (BATCH,), 0, USER_NUM, dtype=jnp.int32)
    item = jax.random.randint(k_i, (BATCH,), 0, ITEM_NUM, dtype=jnp.int32)
    rating = jax.random.randint(k_r, (BATCH,), 0, RATING_RANGE + 1, dtype=jnp.int32)

    hidden, u_e, i_e, r_e = encoder_forward_pallas(params, user, item, rating)
    jax.block_until_ready((hidden, u_e, i_e, r_e))

    # sanity check vs. plain-JAX reference of the same math
    u_ref = jnp.take(params["user_embedding"], user, axis=0)
    i_ref = jnp.take(params["item_embedding"], item, axis=0)
    r_ref = jnp.take(params["rating_embedding"], rating, axis=0)
    concat_ref = jnp.concatenate([u_ref, i_ref, r_ref], axis=-1)
    hidden_ref = jnp.tanh(concat_ref @ params["hidden_w"] + params["hidden_b"])

    assert hidden.shape == (BATCH, DEC_HID_DIM)
    assert u_e.shape == (BATCH, ENC_HID_DIM)
    assert jnp.allclose(u_e, u_ref, atol=1e-6), "user embed mismatch"
    assert jnp.allclose(i_e, i_ref, atol=1e-6), "item embed mismatch"
    assert jnp.allclose(r_e, r_ref, atol=1e-6), "rating embed mismatch"
    assert jnp.allclose(hidden, hidden_ref, atol=1e-5), "hidden mismatch vs reference"

    print("KERNEL_OK")
</pallas_src>

<mosaic_0001>
module attributes {stable_mosaic.version = 11 : i64} {
  func.func @encoder_kernel(%arg0: i32, %arg1: memref<8x3xi32, #tpu.memory_space<vmem>>, %arg2: memref<40x128xf32, #tpu.memory_space<vmem>>, %arg3: memref<8x128xf32, #tpu.memory_space<vmem>>) attributes {dimension_semantics = [#tpu.dimension_semantics<parallel>], iteration_bounds = array<i64: 1>, scalar_prefetch = 0 : i64, scratch_operands = 0 : i64, tpu.core_type = #tpu.core_type<tc>, window_params = [{transform_indices = @transform_0, window_bounds = array<i64: 8, 3>}, {pipeline_mode = #tpu.pipeline_mode<synchronous>, transform_indices = @transform_1, window_bounds = array<i64: 40, 128>}, {transform_indices = @transform_2, window_bounds = array<i64: 8, 128>}]} {
    %c0 = arith.constant 0 : index
    %c0_0 = arith.constant 0 : index
    %0 = vector.load %arg1[%c0, %c0_0] : memref<8x3xi32, #tpu.memory_space<vmem>>, vector<8x3xi32>
    %1 = tpu.iota {dimensions = array<i32: 1>} : vector<8x40xi32>
    %2 = vector.extract_strided_slice %0 {offsets = [0, 0], sizes = [8, 1], strides = [1, 1]} : vector<8x3xi32> to vector<8x1xi32>
    %3 = vector.broadcast %2 : vector<8x1xi32> to vector<8x40xi32>
    %4 = arith.cmpi eq, %1, %3 : vector<8x40xi32>
    %5 = vector.extract_strided_slice %0 {offsets = [0, 1], sizes = [8, 1], strides = [1, 1]} : vector<8x3xi32> to vector<8x1xi32>
    %6 = vector.broadcast %5 : vector<8x1xi32> to vector<8x40xi32>
    %7 = arith.cmpi eq, %1, %6 : vector<8x40xi32>
    %8 = arith.ori %4, %7 : vector<8x40xi1>
    %9 = vector.extract_strided_slice %0 {offsets = [0, 2], sizes = [8, 1], strides = [1, 1]} : vector<8x3xi32> to vector<8x1xi32>
    %10 = vector.broadcast %9 : vector<8x1xi32> to vector<8x40xi32>
    %11 = arith.cmpi eq, %1, %10 : vector<8x40xi32>
    %12 = arith.ori %8, %11 : vector<8x40xi1>
    %c36_i32 = arith.constant 36 : i32
    %13 = vector.broadcast %c36_i32 : i32 to vector<8x40xi32>
    %14 = arith.cmpi eq, %1, %13 : vector<8x40xi32>
    %15 = arith.ori %12, %14 : vector<8x40xi1>
    %16 = arith.extui %15 : vector<8x40xi1> to vector<8x40xi32>
    %17 = arith.sitofp %16 : vector<8x40xi32> to vector<8x40xf32>
    %c0_1 = arith.constant 0 : index
    %c0_2 = arith.constant 0 : index
    %18 = vector.load %arg2[%c0_1, %c0_2] : memref<40x128xf32, #tpu.memory_space<vmem>>, vector<40x128xf32>
    %cst = arith.constant dense<0.000000e+00> : vector<8x128xf32>
    %19 = tpu.matmul %17, %18, %cst {dimension_numbers = #tpu.dot_dimension_numbers<[1], [0], [0], [1], [0, 0, 1, 1], [], []>} : vector<8x40xf32>, vector<40x128xf32>, vector<8x128xf32> -> vector<8x128xf32>
    %20 = tpu.iota {dimensions = array<i32: 1>} : vector<8x128xi32>
    %c32_i32 = arith.constant 32 : i32
    %21 = vector.broadcast %c32_i32 : i32 to vector<8x128xi32>
    %22 = arith.cmpi slt, %20, %21 : vector<8x128xi32>
    %23 = math.tanh %19 : vector<8x128xf32>
    %24 = arith.select %22, %23, %19 : vector<8x128xi1>, vector<8x128xf32>
    %c0_3 = arith.constant 0 : index
    %c0_4 = arith.constant 0 : index
    %25 = vector.load %arg3[%c0_3, %c0_4] : memref<8x128xf32, #tpu.memory_space<vmem>>, vector<8x128xf32>
    tpu.vector_store %arg3[%c0_3, %c0_4], %24 {strides = array<i32>} : memref<8x128xf32, #tpu.memory_space<vmem>>, vector<8x128xf32>,
    return
  }
  func.func @transform_0(%arg0: i32) -> (i32, i32) {
    %c0_i32 = arith.constant 0 : i32
    %c0_i32_0 = arith.constant 0 : i32
    return %arg0, %c0_i32 : i32, i32
  }
  func.func @transform_1(%arg0: i32) -> (i32, i32) {
    %c0_i32 = arith.constant 0 : i32
    %c0_i32_0 = arith.constant 0 : i32
    %c0_i32_1 = arith.constant 0 : i32
    return %c0_i32, %c0_i32_0 : i32, i32
  }
  func.func @transform_2(%arg0: i32) -> (i32, i32) {
    %c0_i32 = arith.constant 0 : i32
    %c0_i32_0 = arith.constant 0 : i32
    return %arg0, %c0_i32 : i32, i32
  }
}

</mosaic_0001>

<bundles_post_ra>
// kernel: tpu_custom_call.1
= control target key start
LH: loop header
LB: loop body
LE: loop exit
PB: predicated region body
PF: predicated region fallthrough
CT: control target
= control target key end

     0   :  { %7 = vsyncpa [#allocation3], 0  ;;  %s288_s0 = inlined_call_operand.vmem [shape: s32[8,3], index: 0, kind: input, shape index: {}]   ;;  %s289_s1 = inlined_call_operand.hbm [shape: f32[40,128], index: 1, kind: input, shape index: {}]   ;;  %s290_s2 = inlined_call_operand.hbm [shape: f32[8,128], index: 2, kind: output, shape index: {}]  }
   0x1   :  { %8 = vsyncpa [#allocation4], 0  ;;  %s236_s9 = smov [#allocation2]   ;;  %s188_s13 = scalar_lea.hbm %s289_s1, 640 }
   0x2   :  { %s16_s10 = sshll.u32 %s236_s9, 4  ;;  %p189_p0 = scmp.ne.s32.totalorder %s289_s1, %s188_s13  ;;  %s17_s10 = int_to_ptr.vmem [resolvable:$true] %s16_s10 }
   0x3   :  { %p192_p1 = scmp.lt.u32.totalorder %s188_s13, %s289_s1 }
   0x5   :  { %p194_p2 = pnand %p192_p1, %p189_p0 }
   0x7   :  { %197 = shalt.err (!%p194_p2)
}
   0x8   :  { %s198_s18 = scalar_lea.vmem %s17_s10, 640  ;;  %p203_p4 = scmp.lt.s32.totalorder %s17_s10, %s17_s10 }
   0x9   :  { %p199_p3 = scmp.ne.s32.totalorder %s17_s10, %s198_s18  ;;  %p204_p5 = scmp.lt.s32.totalorder %s198_s18, %s198_s18 }
   0xb   :  { %p205_p6 = por %p204_p5, %p203_p4 }
   0xd   :  { %p206_p7 = pnand %p205_p6, %p199_p3 }
   0xf   :  { %209 = shalt.err (!%p206_p7)
}
  0x10   :  { %s237_s19 = smov 128   ;;  %s238_s20 = smov 8  }
  0x11   :  { %22 = dma.hbm_to_vmem [thread:$0]  %s289_s1, 640, %s17_s10, [#allocation3], %s237_s19, %s237_s19, %s238_s20  }
  0x12   :  { %232 = dma.done.wait [#allocation3], 640  }
  0x13   :  { %233 = vsyncadd [#allocation3], 4294966656  ;;  %v239_v0 = vmov 0   ;;  %v240_v1 = vmov 2   ;;  %v26_v2 = vld [vmem:[%s288_s0] sm:$0xff]  ;;  %v48_v4 = vld [vmem:[#allocation2 + $0x8] sm:$0xff]  ;;  %v27_v13 = vlaneseq }
  0x14   :  { %182 = vset.pattern.permute.xlu0 %v239_v0  ;;  %184 = vset.pattern.permute.xlu1 %v240_v1  ;;  %v47_v3 = vld [vmem:[#allocation2] sm:$0xff]  ;;  %v241_v6 = vmov 0.0|0.0   ;;  %v49_v7 = vld [vmem:[#allocation2 + $0x10] sm:$0xff]  ;;  %v50_v8 = vld [vmem:[#allocation2 + $0x18] sm:$0xff]  ;;  %v242_v10 = vmov 1   ;;  %v243_v11 = vmov 0.0  }
  0x15   :  { %30 = vperm.xlu0 %182, %v26_v2   ;;  %39 = vperm.xlu1 %184, %v26_v2   ;;  %v167_v5 = vpack.c.bf16 %v48_v4, %v47_v3  ;;  %v170_v9 = vpack.c.bf16 %v50_v8, %v49_v7  ;;  %v51_v12 = vld [vmem:[#allocation2 + $0x20] sm:$0xff]  ;;  %vm244_vm0 = vmmov 0   ;;  %v28_v15 = vand.u32 127, %v27_v13  ;;  %s245_s0 = smov [#allocation5]  }
  0x16   :  { %166 = vmatprep.subr.bf16.mxu0 %v241_v6  ;;  %163 = vmatprep.mubr.msk.f32.mxu0 %vm244_vm0, %v243_v11  ;;  %vm52_vm7 = vcmask 326656   ;;  %s136_s1 = sshll.u32 %s245_s0, 4  ;;  %s137_s1 = int_to_ptr.vmem [resolvable:$true] %s136_s1 }
  0x17   :  { %168 = vmatpush3.bf16.msra.mxu0 %v167_v5  ;;  %vm43_vm4 = vcmp.eq.s32.totalorder %v28_v15, 36  ;;  %vm126_vm9 = vcmp.lt.s32.totalorder %v28_v15, 32  ;;  %s210_s25 = scalar_lea.vmem %s137_s1, 128  ;;  %p215_p9 = scmp.lt.s32.totalorder %s137_s1, %s137_s1 }
  0x18   :  { %169 = vmatprep.subr.bf16.mxu0 %v241_v6  ;;  %p211_p8 = scmp.ne.s32.totalorder %s137_s1, %s210_s25  ;;  %p216_p10 = scmp.lt.s32.totalorder %s210_s25, %s210_s25 }
  0x19   :  { %183 = vset.pattern.permute.xlu0 %v242_v10 }
  0x1a   :  { %34 = vperm.xlu0 %183, %v26_v2   ;;  %p217_p11 = por %p216_p10, %p215_p9 }
  0x1b   :  { %171 = vmatpush3.bf16.msra.mxu0 %v170_v9 }
  0x1c   :  { %161 = vmatprep.subr.mxu0 %v243_v11  ;;  %p218_p12 = pnand %p217_p11, %p211_p8 }
  0x1e   :  { %185 = vset.pattern.permute.xlu0 %v240_v1 }
  0x1f   :  { %162 = vmatpush3.msra.mxu0 %v51_v12 }
  0x94   :  { %v31_v14 = vpop.permute.xlu0 %30  ;;  %v40_v16 = vpop.permute.xlu1 %39 }
  0x95   :  { %vm41_vm1 = vcmp.eq.s32.totalorder %v28_v15, %v40_v16  ;;  %vm32_vm2 = vcmp.eq.s32.totalorder %v28_v15, %v31_v14 }
  0x99   :  { %v35_v17 = vpop.permute.xlu0 %34 }
  0x9a   :  { %vm36_vm3 = vcmp.eq.s32.totalorder %v28_v15, %v35_v17 }
  0x9b   :  { %vm37_vm5 = vmor %vm32_vm2, %vm36_vm3 }
  0x9c   :  { %vm42_vm6 = vmor %vm37_vm5, %vm41_vm1 }
  0x9d   :  { %vm44_vm8 = vmor %vm42_vm6, %vm43_vm4 }
  0x9e   :  { %v145_v18 = vsel %vm44_vm8, 1.0, %v243_v11 }
  0x9f   :  { %164 = vmatmul.mubr.msk.f32.vlgmr.msra.gmra.mrb[0].mxu0 %vm52_vm7, %v145_v18 }
 0x172   :  { %v122_v19 = vpop.f32.mrb[0].mxu0 }
 0x173   :  { %186 = vtanh.f32 %v122_v19  ;;  %v165_v20 = vpop.f32.mrb[1].mxu0 }
 0x17d   :  { %v187_v21 = vpop.eup %186 }
 0x17e   :  { %v128_v22 = vsel %vm126_vm9, %v187_v21, %v122_v19 }
 0x17f   :  { %129 = vst [vmem:[#allocation5] sm:$0xff] %v128_v22 }
 0x180   :  { %221 = shalt.err (!%p218_p12)
}
 0x181   :  { %s222_s28 = scalar_lea.hbm %s290_s2, 128 }
 0x182   :  { %p223_p13 = scmp.ne.s32.totalorder %s290_s2, %s222_s28  ;;  %p226_p0 = scmp.lt.u32.totalorder %s222_s28, %s290_s2 }
 0x184   :  { %p228_p1 = pnand %p226_p0, %p223_p13 }
 0x186   :  { %231 = shalt.err (!%p228_p1)
}
 0x187   :  { %139 = dma.vmem_to_hbm [thread:$0]  %s137_s1, 128, %s290_s2, [#allocation4]  }
 0x188   :  { %234 = dma.done.wait [#allocation4], 128  }
 0x189   :  { %235 = vsyncadd [#allocation4], 4294967168 }
 0x18a   :  { %143 = vsyncpa [#allocation3], 1 }
 0x18b   :  { %144 = vsyncpa [#allocation4], 1 }

</bundles_post_ra>
